<compile_context>
chip_gen: v6e
topology: v6e:2x2x1
jax: 0.10.0
libtpu: 0.0.40
codegen_flags: <defaults>
</compile_context>

<pallas_src>
import jax
import jax.numpy as jnp
from jax import lax
from jax.experimental import pallas as pl
from jax.experimental.pallas import tpu as pltpu

NEG_SLOPE = 0.01   # nn.LeakyReLU default
LN_EPS = 1e-5      # nn.LayerNorm default

# Keep per-call VMEM footprint well under v7x's 64 MiB physical VMEM.
_VMEM_TILE_BUDGET = 36 * 2**20


def _round_up(x, m):
    return ((x + m - 1) // m) * m


def _leaky_relu(x):
    return jnp.where(x >= 0, x, NEG_SLOPE * x)


def _layer_norm(x, gamma, beta):
    mu = jnp.mean(x, axis=-1, keepdims=True)
    var = jnp.mean((x - mu) ** 2, axis=-1, keepdims=True)  # biased var, as torch
    return (x - mu) * lax.rsqrt(var + LN_EPS) * gamma + beta


def _encoder_kernel(x_ref, w1_ref, b1_ref, g1_ref, bt1_ref,
                    w2_ref, b2_ref, g2_ref, bt2_ref, o_ref):
    # Matmul operands may be bf16 (MXU native); everything after the dot is f32.
    h = jnp.dot(x_ref[...], w1_ref[...], preferred_element_type=jnp.float32)
    h = h + b1_ref[...].astype(jnp.float32)
    h = _layer_norm(_leaky_relu(h), g1_ref[...], bt1_ref[...])

    y = jnp.dot(h.astype(w2_ref.dtype), w2_ref[...],
                preferred_element_type=jnp.float32)
    y = y + b2_ref[...].astype(jnp.float32)
    y = _layer_norm(_leaky_relu(y), g2_ref[...], bt2_ref[...])

    o_ref[...] = y.astype(o_ref.dtype)


def _pick_tile_m(M, obs_dim, emb_dim, in_bytes, out_bytes):
    """Largest multiple-of-8 row tile (<=512) that fits the VMEM budget."""
    # Grid-invariant weights/params are still double-buffered by the pipeline.
    weight_bytes = 2 * ((obs_dim + emb_dim) * emb_dim * in_bytes + 6 * emb_dim * 4)
    # Double-buffered input block + double-buffered output block, per row.
    row_bytes = 2 * (obs_dim * in_bytes + emb_dim * out_bytes)
    avail = max(_VMEM_TILE_BUDGET - weight_bytes, 8 * row_bytes)
    vmem_cap = max(8, (avail // row_bytes) // 8 * 8)
    tile_m = int(min(512, vmem_cap))  # 512 rows ~ 85% of HBM roofline (measured ref)

    m8 = _round_up(max(int(M), 1), 8)
    if m8 <= tile_m:
        # Small problem: don't over-pad. If there is enough work, split into two
        # grid steps so v7x's two TensorCores each get one.
        tile_m = m8 if m8 <= 16 else _round_up((m8 + 1) // 2, 8)
    return tile_m, weight_bytes, row_bytes


def linear_obs_encoder(obs, params, *, tile_m=None, matmul_dtype=None):
    """obs: (..., obs_dim) -> (..., emb_dim), same dtype as obs."""
    w1, b1, g1, bt1, w2, b2, g2, bt2 = params
    obs_dim, emb_dim = w1.shape
    out_dtype = obs.dtype

    lead = obs.shape[:-1]
    x = obs.reshape(-1, obs_dim)
    M = x.shape[0]

    if matmul_dtype is not None:
        # Halve the dominant HBM traffic (activations + weights) for the MXU path.
        x = x.astype(matmul_dtype)
        w1 = w1.astype(matmul_dtype)
        w2 = w2.astype(matmul_dtype)

    in_bytes = jnp.dtype(x.dtype).itemsize
    out_bytes = jnp.dtype(out_dtype).itemsize

    auto_tile, weight_bytes, row_bytes = _pick_tile_m(
        M, obs_dim, emb_dim, in_bytes, out_bytes)
    if tile_m is None:
        tile_m = auto_tile
    assert tile_m % 8 == 0, "tile_m must be a multiple of 8"

    # Pad M to a multiple of tile_m (padded rows are harmless and dropped).
    M_pad = _round_up(M, tile_m)
    if M_pad != M:
        x = jnp.pad(x, ((0, M_pad - M), (0, 0)))

    # 1-D params presented as (1, emb_dim) so they broadcast inside the kernel.
    b1r, g1r, bt1r = b1.reshape(1, -1), g1.reshape(1, -1), bt1.reshape(1, -1)
    b2r, g2r, bt2r = b2.reshape(1, -1), g2.reshape(1, -1), bt2.reshape(1, -1)

    needed = weight_bytes + tile_m * row_bytes
    vmem_limit = int(min(64 * 2**20, max(needed + 8 * 2**20, 32 * 2**20)))

    full = lambda i: (0, 0)  # parameters resident across all grid steps

    out = pl.pallas_call(
        _encoder_kernel,
        out_shape=jax.ShapeDtypeStruct((M_pad, emb_dim), out_dtype),
        grid_spec=pltpu.PrefetchScalarGridSpec(
            num_scalar_prefetch=0,
            grid=(M_pad // tile_m,),
            in_specs=[
                pl.BlockSpec((tile_m, obs_dim), lambda i: (i, 0)),  # x rows
                pl.BlockSpec((obs_dim, emb_dim), full),             # W1 (in,out)
                pl.BlockSpec((1, emb_dim), full),                   # b1
                pl.BlockSpec((1, emb_dim), full),                   # ln1 gamma
                pl.BlockSpec((1, emb_dim), full),                   # ln1 beta
                pl.BlockSpec((emb_dim, emb_dim), full),             # W2 (in,out)
                pl.BlockSpec((1, emb_dim), full),                   # b2
                pl.BlockSpec((1, emb_dim), full),                   # ln2 gamma
                pl.BlockSpec((1, emb_dim), full),                   # ln2 beta
            ],
            out_specs=pl.BlockSpec((tile_m, emb_dim), lambda i: (i, 0)),
        ),
        compiler_params=pltpu.CompilerParams(
            dimension_semantics=("parallel",),
            vmem_limit_bytes=vmem_limit,
        ),
    )(x, w1, b1r, g1r, bt1r, w2, b2r, g2r, bt2r)

    if M_pad != M:
        out = out[:M]
    return out.reshape(*lead, emb_dim)


def init_params(key, obs_dim, emb_dim):
    """Deterministic synthetic parameters (shapes match nn.Module __init__)."""
    k1, k2, k3, k4 = jax.random.split(key, 4)
    # torch.nn.Linear weight is (out, in); store transposed (in, out).
    w1 = jax.random.normal(k1, (obs_dim, emb_dim), jnp.float32) * 0.1
    b1 = jax.random.normal(k2, (emb_dim,), jnp.float32) * 0.1
    g1 = jnp.ones((emb_dim,), jnp.float32)
    bt1 = jnp.zeros((emb_dim,), jnp.float32)
    w2 = jax.random.normal(k3, (emb_dim, emb_dim), jnp.float32) * 0.1
    b2 = jax.random.normal(k4, (emb_dim,), jnp.float32) * 0.1
    g2 = jnp.ones((emb_dim,), jnp.float32)
    bt2 = jnp.zeros((emb_dim,), jnp.float32)
    return (w1, b1, g1, bt1, w2, b2, g2, bt2)


def reference(obs, params):
    w1, b1, g1, bt1, w2, b2, g2, bt2 = params
    h = _leaky_relu(obs @ w1 + b1)
    h = _layer_norm(h, g1, bt1)
    y = _leaky_relu(h @ w2 + b2)
    return _layer_norm(y, g2, bt2)


if __name__ == "__main__":
    key = jax.random.PRNGKey(0)
    k_obs, k_obs2, k_par = jax.random.split(key, 3)

    batch, seq, obs_dim, emb_dim = 2, 8, 16, 32
    obs = jax.random.normal(k_obs, (batch, seq, obs_dim), jnp.float32)
    params = init_params(k_par, obs_dim, emb_dim)

    # f32 path
    out = jax.block_until_ready(linear_obs_encoder(obs, params))
    ref = reference(obs, params)
    assert out.shape == (batch, seq, emb_dim)
    assert jnp.allclose(out, ref, atol=1e-5, rtol=1e-5)

    # Ragged leading dims (exercises the padding path instead of the old assert).
    obs2 = jax.random.normal(k_obs2, (3, 5, obs_dim), jnp.float32)
    out2 = jax.block_until_ready(linear_obs_encoder(obs2, params))
    ref2 = reference(obs2, params)
    assert out2.shape == (3, 5, emb_dim)
    assert jnp.allclose(out2, ref2, atol=1e-5, rtol=1e-5)

    # Optional bf16 matmul operands (halves HBM traffic); loose tolerance check.
    out_bf16 = jax.block_until_ready(
        linear_obs_encoder(obs, params, matmul_dtype=jnp.bfloat16))
    assert out_bf16.shape == (batch, seq, emb_dim)
    assert jnp.allclose(out_bf16, ref, atol=5e-2, rtol=5e-2)

    print("KERNEL_OK")
</pallas_src>

<mosaic_0001>
module attributes {stable_mosaic.version = 11 : i64} {
  func.func @_encoder_kernel(%arg0: i32, %arg1: memref<16x16xf32, #tpu.memory_space<vmem>>, %arg2: memref<16x32xf32, #tpu.memory_space<vmem>>, %arg3: memref<1x32xf32, #tpu.memory_space<vmem>>, %arg4: memref<1x32xf32, #tpu.memory_space<vmem>>, %arg5: memref<1x32xf32, #tpu.memory_space<vmem>>, %arg6: memref<32x32xf32, #tpu.memory_space<vmem>>, %arg7: memref<1x32xf32, #tpu.memory_space<vmem>>, %arg8: memref<1x32xf32, #tpu.memory_space<vmem>>, %arg9: memref<1x32xf32, #tpu.memory_space<vmem>>, %arg10: memref<16x32xf32, #tpu.memory_space<vmem>>) attributes {dimension_semantics = [#tpu.dimension_semantics<parallel>], iteration_bounds = array<i64: 1>, scalar_prefetch = 0 : i64, scratch_operands = 0 : i64, tpu.core_type = #tpu.core_type<tc>, window_params = [{transform_indices = @transform_0, window_bounds = array<i64: 16, 16>}, {pipeline_mode = #tpu.pipeline_mode<synchronous>, transform_indices = @transform_1, window_bounds = array<i64: 16, 32>}, {pipeline_mode = #tpu.pipeline_mode<synchronous>, transform_indices = @transform_2, window_bounds = array<i64: 1, 32>}, {pipeline_mode = #tpu.pipeline_mode<synchronous>, transform_indices = @transform_3, window_bounds = array<i64: 1, 32>}, {pipeline_mode = #tpu.pipeline_mode<synchronous>, transform_indices = @transform_4, window_bounds = array<i64: 1, 32>}, {pipeline_mode = #tpu.pipeline_mode<synchronous>, transform_indices = @transform_5, window_bounds = array<i64: 32, 32>}, {pipeline_mode = #tpu.pipeline_mode<synchronous>, transform_indices = @transform_6, window_bounds = array<i64: 1, 32>}, {pipeline_mode = #tpu.pipeline_mode<synchronous>, transform_indices = @transform_7, window_bounds = array<i64: 1, 32>}, {pipeline_mode = #tpu.pipeline_mode<synchronous>, transform_indices = @transform_8, window_bounds = array<i64: 1, 32>}, {transform_indices = @transform_9, window_bounds = array<i64: 16, 32>}]} {
    %c0 = arith.constant 0 : index
    %c0_0 = arith.constant 0 : index
    %0 = vector.load %arg1[%c0, %c0_0] : memref<16x16xf32, #tpu.memory_space<vmem>>, vector<16x16xf32>
    %c0_1 = arith.constant 0 : index
    %c0_2 = arith.constant 0 : index
    %1 = vector.load %arg2[%c0_1, %c0_2] : memref<16x32xf32, #tpu.memory_space<vmem>>, vector<16x32xf32>
    %cst = arith.constant dense<0.000000e+00> : vector<16x32xf32>
    %2 = tpu.matmul %0, %1, %cst {dimension_numbers = #tpu.dot_dimension_numbers<[1], [0], [0], [1], [0, 0, 1, 1], [], []>} : vector<16x16xf32>, vector<16x32xf32>, vector<16x32xf32> -> vector<16x32xf32>
    %c0_3 = arith.constant 0 : index
    %c0_4 = arith.constant 0 : index
    %3 = vector.load %arg3[%c0_3, %c0_4] : memref<1x32xf32, #tpu.memory_space<vmem>>, vector<1x32xf32>
    %4 = vector.broadcast %3 : vector<1x32xf32> to vector<16x32xf32>
    %5 = arith.addf %2, %4 : vector<16x32xf32>
    %cst_5 = arith.constant 0.000000e+00 : f32
    %6 = vector.broadcast %cst_5 : f32 to vector<16x32xf32>
    %7 = arith.cmpf oge, %5, %6 : vector<16x32xf32>
    %cst_6 = arith.constant 0.00999999977 : f32
    %8 = vector.broadcast %cst_6 : f32 to vector<16x32xf32>
    %9 = arith.mulf %8, %5 : vector<16x32xf32>
    %10 = arith.select %7, %5, %9 : vector<16x32xi1>, vector<16x32xf32>
    %c0_7 = arith.constant 0 : index
    %c0_8 = arith.constant 0 : index
    %11 = vector.load %arg4[%c0_7, %c0_8] : memref<1x32xf32, #tpu.memory_space<vmem>>, vector<1x32xf32>
    %c0_9 = arith.constant 0 : index
    %c0_10 = arith.constant 0 : index
    %12 = vector.load %arg5[%c0_9, %c0_10] : memref<1x32xf32, #tpu.memory_space<vmem>>, vector<1x32xf32>
    %cst_11 = arith.constant dense<0.000000e+00> : vector<16xf32>
    %13 = vector.multi_reduction <add>, %10, %cst_11 [1] : vector<16x32xf32> to vector<16xf32>
    %14 = vector.shape_cast %13 : vector<16xf32> to vector<16x1xf32>
    %cst_12 = arith.constant 3.200000e+01 : f32
    %15 = vector.broadcast %cst_12 : f32 to vector<16x1xf32>
    %16 = arith.divf %14, %15 : vector<16x1xf32>
    %17 = vector.broadcast %16 : vector<16x1xf32> to vector<16x32xf32>
    %18 = arith.subf %10, %17 : vector<16x32xf32>
    %19 = arith.mulf %18, %18 : vector<16x32xf32>
    %cst_13 = arith.constant dense<0.000000e+00> : vector<16xf32>
    %20 = vector.multi_reduction <add>, %19, %cst_13 [1] : vector<16x32xf32> to vector<16xf32>
    %21 = vector.shape_cast %20 : vector<16xf32> to vector<16x1xf32>
    %cst_14 = arith.constant 3.200000e+01 : f32
    %22 = vector.broadcast %cst_14 : f32 to vector<16x1xf32>
    %23 = arith.divf %21, %22 : vector<16x1xf32>
    %24 = vector.broadcast %16 : vector<16x1xf32> to vector<16x32xf32>
    %25 = arith.subf %10, %24 : vector<16x32xf32>
    %cst_15 = arith.constant 9.99999974E-6 : f32
    %26 = vector.broadcast %cst_15 : f32 to vector<16x1xf32>
    %27 = arith.addf %23, %26 : vector<16x1xf32>
    %28 = math.rsqrt %27 : vector<16x1xf32>
    %29 = vector.broadcast %28 : vector<16x1xf32> to vector<16x32xf32>
    %30 = arith.mulf %25, %29 : vector<16x32xf32>
    %31 = vector.broadcast %11 : vector<1x32xf32> to vector<16x32xf32>
    %32 = arith.mulf %30, %31 : vector<16x32xf32>
    %33 = vector.broadcast %12 : vector<1x32xf32> to vector<16x32xf32>
    %34 = arith.addf %32, %33 : vector<16x32xf32>
    %c0_16 = arith.constant 0 : index
    %c0_17 = arith.constant 0 : index
    %35 = vector.load %arg6[%c0_16, %c0_17] : memref<32x32xf32, #tpu.memory_space<vmem>>, vector<32x32xf32>
    %cst_18 = arith.constant dense<0.000000e+00> : vector<16x32xf32>
    %36 = tpu.matmul %34, %35, %cst_18 {dimension_numbers = #tpu.dot_dimension_numbers<[1], [0], [0], [1], [0, 0, 1, 1], [], []>} : vector<16x32xf32>, vector<32x32xf32>, vector<16x32xf32> -> vector<16x32xf32>
    %c0_19 = arith.constant 0 : index
    %c0_20 = arith.constant 0 : index
    %37 = vector.load %arg7[%c0_19, %c0_20] : memref<1x32xf32, #tpu.memory_space<vmem>>, vector<1x32xf32>
    %38 = vector.broadcast %37 : vector<1x32xf32> to vector<16x32xf32>
    %39 = arith.addf %36, %38 : vector<16x32xf32>
    %cst_21 = arith.constant 0.000000e+00 : f32
    %40 = vector.broadcast %cst_21 : f32 to vector<16x32xf32>
    %41 = arith.cmpf oge, %39, %40 : vector<16x32xf32>
    %cst_22 = arith.constant 0.00999999977 : f32
    %42 = vector.broadcast %cst_22 : f32 to vector<16x32xf32>
    %43 = arith.mulf %42, %39 : vector<16x32xf32>
    %44 = arith.select %41, %39, %43 : vector<16x32xi1>, vector<16x32xf32>
    %c0_23 = arith.constant 0 : index
    %c0_24 = arith.constant 0 : index
    %45 = vector.load %arg8[%c0_23, %c0_24] : memref<1x32xf32, #tpu.memory_space<vmem>>, vector<1x32xf32>
    %c0_25 = arith.constant 0 : index
    %c0_26 = arith.constant 0 : index
    %46 = vector.load %arg9[%c0_25, %c0_26] : memref<1x32xf32, #tpu.memory_space<vmem>>, vector<1x32xf32>
    %cst_27 = arith.constant dense<0.000000e+00> : vector<16xf32>
    %47 = vector.multi_reduction <add>, %44, %cst_27 [1] : vector<16x32xf32> to vector<16xf32>
    %48 = vector.shape_cast %47 : vector<16xf32> to vector<16x1xf32>
    %cst_28 = arith.constant 3.200000e+01 : f32
    %49 = vector.broadcast %cst_28 : f32 to vector<16x1xf32>
    %50 = arith.divf %48, %49 : vector<16x1xf32>
    %51 = vector.broadcast %50 : vector<16x1xf32> to vector<16x32xf32>
    %52 = arith.subf %44, %51 : vector<16x32xf32>
    %53 = arith.mulf %52, %52 : vector<16x32xf32>
    %cst_29 = arith.constant dense<0.000000e+00> : vector<16xf32>
    %54 = vector.multi_reduction <add>, %53, %cst_29 [1] : vector<16x32xf32> to vector<16xf32>
    %55 = vector.shape_cast %54 : vector<16xf32> to vector<16x1xf32>
    %cst_30 = arith.constant 3.200000e+01 : f32
    %56 = vector.broadcast %cst_30 : f32 to vector<16x1xf32>
    %57 = arith.divf %55, %56 : vector<16x1xf32>
    %58 = vector.broadcast %50 : vector<16x1xf32> to vector<16x32xf32>
    %59 = arith.subf %44, %58 : vector<16x32xf32>
    %cst_31 = arith.constant 9.99999974E-6 : f32
    %60 = vector.broadcast %cst_31 : f32 to vector<16x1xf32>
    %61 = arith.addf %57, %60 : vector<16x1xf32>
    %62 = math.rsqrt %61 : vector<16x1xf32>
    %63 = vector.broadcast %62 : vector<16x1xf32> to vector<16x32xf32>
    %64 = arith.mulf %59, %63 : vector<16x32xf32>
    %65 = vector.broadcast %45 : vector<1x32xf32> to vector<16x32xf32>
    %66 = arith.mulf %64, %65 : vector<16x32xf32>
    %67 = vector.broadcast %46 : vector<1x32xf32> to vector<16x32xf32>
    %68 = arith.addf %66, %67 : vector<16x32xf32>
    %c0_32 = arith.constant 0 : index
    %c0_33 = arith.constant 0 : index
    %69 = vector.load %arg10[%c0_32, %c0_33] : memref<16x32xf32, #tpu.memory_space<vmem>>, vector<16x32xf32>
    tpu.vector_store %arg10[%c0_32, %c0_33], %68 {strides = array<i32>} : memref<16x32xf32, #tpu.memory_space<vmem>>, vector<16x32xf32>,
    return
  }
  func.func @transform_0(%arg0: i32) -> (i32, i32) {
    %c0_i32 = arith.constant 0 : i32
    %c0_i32_0 = arith.constant 0 : i32
    return %arg0, %c0_i32 : i32, i32
  }
  func.func @transform_1(%arg0: i32) -> (i32, i32) {
    %c0_i32 = arith.constant 0 : i32
    %c0_i32_0 = arith.constant 0 : i32
    %c0_i32_1 = arith.constant 0 : i32
    return %c0_i32, %c0_i32_0 : i32, i32
  }
  func.func @transform_2(%arg0: i32) -> (i32, i32) {
    %c0_i32 = arith.constant 0 : i32
    %c0_i32_0 = arith.constant 0 : i32
    %c0_i32_1 = arith.constant 0 : i32
    return %c0_i32, %c0_i32_0 : i32, i32
  }
  func.func @transform_3(%arg0: i32) -> (i32, i32) {
    %c0_i32 = arith.constant 0 : i32
    %c0_i32_0 = arith.constant 0 : i32
    %c0_i32_1 = arith.constant 0 : i32
    return %c0_i32, %c0_i32_0 : i32, i32
  }
  func.func @transform_4(%arg0: i32) -> (i32, i32) {
    %c0_i32 = arith.constant 0 : i32
    %c0_i32_0 = arith.constant 0 : i32
    %c0_i32_1 = arith.constant 0 : i32
    return %c0_i32, %c0_i32_0 : i32, i32
  }
  func.func @transform_5(%arg0: i32) -> (i32, i32) {
    %c0_i32 = arith.constant 0 : i32
    %c0_i32_0 = arith.constant 0 : i32
    %c0_i32_1 = arith.constant 0 : i32
    return %c0_i32, %c0_i32_0 : i32, i32
  }
  func.func @transform_6(%arg0: i32) -> (i32, i32) {
    %c0_i32 = arith.constant 0 : i32
    %c0_i32_0 = arith.constant 0 : i32
    %c0_i32_1 = arith.constant 0 : i32
    return %c0_i32, %c0_i32_0 : i32, i32
  }
  func.func @transform_7(%arg0: i32) -> (i32, i32) {
    %c0_i32 = arith.constant 0 : i32
    %c0_i32_0 = arith.constant 0 : i32
    %c0_i32_1 = arith.constant 0 : i32
    return %c0_i32, %c0_i32_0 : i32, i32
  }
  func.func @transform_8(%arg0: i32) -> (i32, i32) {
    %c0_i32 = arith.constant 0 : i32
    %c0_i32_0 = arith.constant 0 : i32
    %c0_i32_1 = arith.constant 0 : i32
    return %c0_i32, %c0_i32_0 : i32, i32
  }
  func.func @transform_9(%arg0: i32) -> (i32, i32) {
    %c0_i32 = arith.constant 0 : i32
    %c0_i32_0 = arith.constant 0 : i32
    return %arg0, %c0_i32 : i32, i32
  }
}

</mosaic_0001>

<bundles_post_ra>
// kernel: tpu_custom_call.1
= control target key start
LH: loop header
LB: loop body
LE: loop exit
PB: predicated region body
PF: predicated region fallthrough
CT: control target
= control target key end

     0   :  { %14 = vsyncpa [#allocation3], 0  ;;  %s629_s0 = inlined_call_operand.hbm [shape: f32[16,16], index: 0, kind: input, shape index: {}]   ;;  %s630_s1 = inlined_call_operand.hbm [shape: f32[16,32], index: 1, kind: input, shape index: {}]   ;;  %s631_s2 = inlined_call_operand.vmem [shape: f32[1,32], index: 2, kind: input, shape index: {}]   ;;  %s632_s3 = inlined_call_operand.vmem [shape: f32[1,32], index: 3, kind: input, shape index: {}]   ;;  %s633_s4 = inlined_call_operand.vmem [shape: f32[1,32], index: 4, kind: input, shape index: {}]   ;;  %s634_s5 = inlined_call_operand.hbm [shape: f32[32,32], index: 5, kind: input, shape index: {}]   ;;  %s635_s6 = inlined_call_operand.vmem [shape: f32[1,32], index: 6, kind: input, shape index: {}]   ;;  %s636_s7 = inlined_call_operand.vmem [shape: f32[1,32], index: 7, kind: input, shape index: {}]   ;;  %s637_s8 = inlined_call_operand.vmem [shape: f32[1,32], index: 8, kind: input, shape index: {}]   ;;  %s638_s9 = inlined_call_operand.hbm [shape: f32[16,32], index: 9, kind: output, shape index: {}]  }
   0x1   :  { %15 = vsyncpa [#allocation6], 0 }
   0x2   :  { %16 = vsyncpa [#allocation4], 0  ;;  %s519_s30 = smov [#allocation5]   ;;  %s520_s11 = smov [#allocation2]  }
   0x3   :  { %s34_s10 = sshll.u32 %s519_s30, 4  ;;  %s22_s12 = sshll.u32 %s520_s11, 4  ;;  %s35_s10 = int_to_ptr.vmem [resolvable:$true] %s34_s10  ;;  %s23_s12 = int_to_ptr.vmem [resolvable:$true] %s22_s12 }
   0x4   :  { %s441_s13 = scalar_lea.vmem %s35_s10, 256  ;;  %p446_p1 = scmp.lt.s32.totalorder %s35_s10, %s35_s10 }
   0x5   :  { %p442_p0 = scmp.ne.s32.totalorder %s35_s10, %s441_s13  ;;  %p447_p2 = scmp.lt.s32.totalorder %s441_s13, %s441_s13 }
   0x7   :  { %p448_p3 = por %p447_p2, %p446_p1 }
   0x9   :  { %p449_p4 = pnand %p448_p3, %p442_p0 }
   0xb   :  { %452 = shalt.err (!%p449_p4)
}
   0xc   :  { %s521_s14 = smov 128   ;;  %s522_s15 = smov 8  }
   0xd   :  { %40 = dma.hbm_to_vmem [thread:$0]  %s630_s1, 256, %s35_s10, [#allocation6], %s521_s14, %s521_s14, %s522_s15  }
   0xe   :  { %s461_s18 = scalar_lea.vmem %s23_s12, 256  ;;  %p466_p6 = scmp.lt.s32.totalorder %s23_s12, %s23_s12 }
   0xf   :  { %p462_p5 = scmp.ne.s32.totalorder %s23_s12, %s461_s18  ;;  %p467_p7 = scmp.lt.s32.totalorder %s461_s18, %s461_s18 }
  0x11   :  { %p468_p8 = por %p467_p7, %p466_p6 }
  0x13   :  { %p469_p9 = pnand %p468_p8, %p462_p5 }
  0x15   :  { %472 = shalt.err (!%p469_p9)
}
  0x16   :  { %28 = dma.hbm_to_vmem [thread:$0]  %s629_s0, 256, %s23_s12, [#allocation3], %s521_s14, %s521_s14, %s522_s15  }
  0x17   :  { %s523_s21 = smov [#allocation7]  }
  0x18   :  { %s52_s22 = sshll.u32 %s523_s21, 4  ;;  %s53_s22 = int_to_ptr.vmem [resolvable:$true] %s52_s22 }
  0x19   :  { %s481_s23 = scalar_lea.vmem %s53_s22, 512  ;;  %p486_p11 = scmp.lt.s32.totalorder %s53_s22, %s53_s22 }
  0x1a   :  { %p482_p10 = scmp.ne.s32.totalorder %s53_s22, %s481_s23  ;;  %p487_p12 = scmp.lt.s32.totalorder %s481_s23, %s481_s23 }
  0x1c   :  { %p488_p13 = por %p487_p12, %p486_p11 }
  0x1e   :  { %p489_p0 = pnand %p488_p13, %p482_p10 }
  0x20   :  { %492 = shalt.err (!%p489_p0)
}
  0x21   :  { %58 = dma.hbm_to_vmem [thread:$0]  %s634_s5, 512, %s53_s22, [#allocation6], %s521_s14, %s521_s14, %s522_s15  }
  0x22   :  { %513 = dma.done.wait [#allocation3], 256  }
  0x23   :  { %514 = vsyncadd [#allocation3], 4294967040 }
  0x24   :  { %515 = dma.done.wait [#allocation6], 768  }
  0x25   :  { %516 = vsyncadd [#allocation6], 4294966528  ;;  %vm85_vm0 = vcmask 130048   ;;  %v77_v0 = vld [vmem:[#allocation5 + $0x8] sm:$0xff]  ;;  %v76_v1 = vld [vmem:[#allocation5] sm:$0xff]  ;;  %vm175_vm3 = vcmask 261120  }
  0x26   :  { %v74_v2 = vld [vmem:[#allocation2] sm:$0xff]  ;;  %401 = vmatprep.subr.mxu0 %v77_v0  ;;  %v75_v3 = vld [vmem:[#allocation2 + $0x8] sm:$0xff]  ;;  %v222_v25 = vld [vmem:[#allocation7 + $0x18] sm:$0xff]  ;;  %s524_s10 = smov [#allocation8]  }
  0x27   :  { %405 = vmatprep.mubr.msk.f32.mxu0 %vm85_vm0, %v74_v2  ;;  %402 = vmatpush3.msra.mxu0 %v77_v0  ;;  %v381_v4 = vld [vmem:[%s631_s2] ss:$0 sm:$0xff]  ;;  %v221_v26 = vld [vmem:[#allocation7 + $0x10] sm:$0xff]  ;;  %v220_v27 = vld [vmem:[#allocation7 + $0x8] sm:$0xff]  ;;  %s368_s11 = sshll.u32 %s524_s10, 4  ;;  %s369_s11 = int_to_ptr.vmem [resolvable:$true] %s368_s11 }
  0x28   :  { %403 = vmatprep.subr.mxu0 %v76_v1  ;;  %408 = vmatprep.subr.mxu1 %v222_v25  ;;  %v219_v28 = vld [vmem:[#allocation7] sm:$0xff]  ;;  %s493_s12 = scalar_lea.vmem %s369_s11, 256  ;;  %p498_p2 = scmp.lt.s32.totalorder %s369_s11, %s369_s11 }
  0x29   :  { %404 = vmatpush3.msra.mxu0 %v76_v1  ;;  %409 = vmatpush3.msra.mxu1 %v222_v25  ;;  %v384_v36 = vld [vmem:[%s632_s3] ss:$0 sm:$0xff]  ;;  %p494_p1 = scmp.ne.s32.totalorder %s369_s11, %s493_s12  ;;  %p499_p3 = scmp.lt.s32.totalorder %s493_s12, %s493_s12 }
  0x2a   :  { %406 = vmatmul.mubr.msk.f32.vlgmr.msra.gmra.mxu0 %vm85_vm0, %v75_v3  ;;  %410 = vmatprep.subr.mxu1 %v221_v26  ;;  %v385_v38 = vld [vmem:[%s633_s4] ss:$0 sm:$0xff] }
  0x2b   :  { %411 = vmatpush3.msra.mxu1 %v221_v26  ;;  %v386_v45 = vld [vmem:[%s635_s6] ss:$0 sm:$0xff]  ;;  %p500_p4 = por %p499_p3, %p498_p2 }
  0x2c   :  { %412 = vmatprep.subr.mxu1 %v220_v27 }
  0x2d   :  { %413 = vmatpush3.msra.mxu1 %v220_v27  ;;  %p501_p5 = pnand %p500_p4, %p494_p1 }
  0x2e   :  { %414 = vmatprep.subr.mxu1 %v219_v28 }
  0x2f   :  { %415 = vmatpush3.msra.mxu1 %v219_v28 }
  0xea   :  { %v407_v5 = vpop.f32.mrf.mxu0 }
  0xeb   :  { %v164_v6 = vadd.f32 %v407_v5, %v381_v4 }
  0xec   :  { %v158_v7 = vpop.f32.mrf.mxu0 }
  0xed   :  { %v159_v8 = vadd.f32 %v381_v4, %v158_v7  ;;  %v170_v9 = vmul.f32 0.01, %v164_v6  ;;  %vm168_vm2 = vcmp.ge.f32.partialorder %v164_v6, 0.0 }
  0xef   :  { %v169_v10 = vmul.f32 0.01, %v159_v8  ;;  %vm167_vm1 = vcmp.ge.f32.partialorder %v159_v8, 0.0  ;;  %v172_v13 = vsel %vm168_vm2, %v164_v6, %v170_v9  ;;  %v389_v9 = vld [vmem:[%s636_s7] ss:$0 sm:$0xff] }
  0xf0   :  { %v179_v14 = vsel %vm175_vm3, %v172_v13, 0.0 }
  0xf1   :  { %v171_v11 = vsel %vm167_vm1, %v159_v8, %v169_v10 }
  0xf2   :  { %v176_v12 = vsel %vm175_vm3, %v171_v11, 0.0 }
  0xf3   :  { %177 = vadd.xlane.f32.xlu0 %v176_v12  ;;  %v390_v12 = vld [vmem:[%s637_s8] ss:$0 sm:$0xff] }
  0xf7   :  { %180 = vadd.xlane.f32.xlu0 %v179_v14 }
 0x17c   :  { %v178_v15 = vpop.xlane.xlu0 %177 }
 0x17d   :  { %v183_v16 = vmul.f32 0.03125, %v178_v15 }
 0x17f   :  { %v185_v17 = vsub.f32 %v171_v11, %v183_v16 }
 0x180   :  { %v181_v18 = vpop.xlane.xlu0 %180 }
 0x181   :  { %v184_v19 = vmul.f32 0.03125, %v181_v18  ;;  %v187_v20 = vmul.f32 %v185_v17, %v185_v17 }
 0x183   :  { %v186_v21 = vsub.f32 %v172_v13, %v184_v19  ;;  %v189_v22 = vsel %vm175_vm3, %v187_v20, 0.0 }
 0x184   :  { %190 = vadd.xlane.f32.xlu1 %v189_v22 }
 0x185   :  { %v188_v23 = vmul.f32 %v186_v21, %v186_v21 }
 0x187   :  { %v192_v24 = vsel %vm175_vm3, %v188_v23, 0.0 }
 0x188   :  { %193 = vadd.xlane.f32.xlu1 %v192_v24 }
 0x20d   :  { %v191_v29 = vpop.xlane.xlu1 %190 }
 0x20e   :  { %v195_v30 = vmul.f32 0.03125, %v191_v29 }
 0x210   :  { %v197_v31 = vadd.f32 1e-05, %v195_v30 }
 0x211   :  { %v194_v32 = vpop.xlane.xlu1 %193 }
 0x212   :  { %425 = vrsqrt.f32 %v197_v31  ;;  %v196_v33 = vmul.f32 0.03125, %v194_v32 }
 0x214   :  { %v198_v34 = vadd.f32 1e-05, %v196_v33 }
 0x216   :  { %427 = vrsqrt.f32 %v198_v34 }
 0x21f   :  { %v426_v35 = vpop.eup %425 }
 0x220   :  { %v201_v37 = vmul.f32 %v426_v35, %v185_v17 }
 0x222   :  { %v209_v39 = vmul.f32 %v384_v36, %v201_v37 }
 0x223   :  { %v428_v40 = vpop.eup %427 }
 0x224   :  { %v202_v41 = vmul.f32 %v428_v40, %v186_v21  ;;  %v217_v42 = vadd.f32 %v385_v38, %v209_v39 }
 0x226   :  { %v210_v43 = vmul.f32 %v384_v36, %v202_v41  ;;  %416 = vmatprep.mubr.msk.f32.mxu1 %vm175_vm3, %v217_v42 }
 0x228   :  { %v218_v44 = vadd.f32 %v385_v38, %v210_v43 }
 0x22a   :  { %417 = vmatmul.mubr.msk.f32.vlgmr.msra.gmra.mxu1 %vm175_vm3, %v218_v44 }
 0x2ea   :  { %v418_v46 = vpop.f32.mrf.mxu1 }
 0x2eb   :  { %v308_v47 = vadd.f32 %v418_v46, %v386_v45 }
 0x2ec   :  { %v302_v48 = vpop.f32.mrf.mxu1 }
 0x2ed   :  { %v314_v49 = vmul.f32 0.01, %v308_v47  ;;  %v303_v50 = vadd.f32 %v386_v45, %v302_v48  ;;  %vm312_vm4 = vcmp.ge.f32.partialorder %v308_v47, 0.0 }
 0x2ef   :  { %v313_v51 = vmul.f32 0.01, %v303_v50  ;;  %v316_v52 = vsel %vm312_vm4, %v308_v47, %v314_v49  ;;  %vm311_vm5 = vcmp.ge.f32.partialorder %v303_v50, 0.0 }
 0x2f0   :  { %v322_v53 = vsel %vm175_vm3, %v316_v52, 0.0 }
 0x2f1   :  { %323 = vadd.xlane.f32.xlu1 %v322_v53  ;;  %v315_v54 = vsel %vm311_vm5, %v303_v50, %v313_v51 }
 0x2f2   :  { %v319_v55 = vsel %vm175_vm3, %v315_v54, 0.0 }
 0x2f3   :  { %320 = vadd.xlane.f32.xlu0 %v319_v55 }
 0x37a   :  { %v324_v56 = vpop.xlane.xlu1 %323 }
 0x37b   :  { %v326_v57 = vmul.f32 0.03125, %v324_v56 }
 0x37c   :  { %v321_v58 = vpop.xlane.xlu0 %320 }
 0x37d   :  { %v328_v59 = vsub.f32 %v316_v52, %v326_v57  ;;  %v325_v60 = vmul.f32 0.03125, %v321_v58 }
 0x37f   :  { %v327_v61 = vsub.f32 %v315_v54, %v325_v60  ;;  %v330_v62 = vmul.f32 %v328_v59, %v328_v59 }
 0x381   :  { %v334_v63 = vsel %vm175_vm3, %v330_v62, 0.0  ;;  %v329_v0 = vmul.f32 %v327_v61, %v327_v61 }
 0x382   :  { %335 = vadd.xlane.f32.xlu1 %v334_v63 }
 0x383   :  { %v331_v1 = vsel %vm175_vm3, %v329_v0, 0.0 }
 0x384   :  { %332 = vadd.xlane.f32.xlu0 %v331_v1 }
 0x40b   :  { %v336_v2 = vpop.xlane.xlu1 %335 }
 0x40c   :  { %v338_v3 = vmul.f32 0.03125, %v336_v2 }
 0x40d   :  { %v333_v4 = vpop.xlane.xlu0 %332 }
 0x40e   :  { %v340_v5 = vadd.f32 1e-05, %v338_v3  ;;  %v337_v6 = vmul.f32 0.03125, %v333_v4 }
 0x410   :  { %429 = vrsqrt.f32 %v340_v5  ;;  %v339_v7 = vadd.f32 1e-05, %v337_v6 }
 0x412   :  { %431 = vrsqrt.f32 %v339_v7 }
 0x41d   :  { %v430_v8 = vpop.eup %429 }
 0x41e   :  { %v344_v10 = vmul.f32 %v430_v8, %v328_v59 }
 0x41f   :  { %v432_v11 = vpop.eup %431 }
 0x420   :  { %v343_v13 = vmul.f32 %v432_v11, %v327_v61  ;;  %v352_v14 = vmul.f32 %v389_v9, %v344_v10 }
 0x422   :  { %v351_v15 = vmul.f32 %v389_v9, %v343_v13  ;;  %v360_v16 = vadd.f32 %v390_v12, %v352_v14 }
 0x424   :  { %v359_v17 = vadd.f32 %v390_v12, %v351_v15  ;;  %362 = vst.msk [vmem:[#allocation8 + $0x8] sm:$0xff] %vm175_vm3, %v360_v16 }
 0x426   :  { %361 = vst.msk [vmem:[#allocation8] sm:$0xff] %vm175_vm3, %v359_v17 }
 0x427   :  { %504 = shalt.err (!%p501_p5)
}
 0x428   :  { %374 = dma.vmem_to_hbm [thread:$0]  %s369_s11, 256, %s638_s9, [#allocation4], %s521_s14, %s521_s14, %s522_s15  }
 0x429   :  { %517 = dma.done.wait [#allocation4], 256  }
 0x42a   :  { %518 = vsyncadd [#allocation4], 4294967040 }
 0x42b   :  { %378 = vsyncpa [#allocation3], 1 }
 0x42c   :  { %379 = vsyncpa [#allocation6], 1 }
 0x42d   :  { %380 = vsyncpa [#allocation4], 1 }

</bundles_post_ra>
